<compile_context>
chip_gen: v6e
topology: v6e:2x2x1
jax: 0.10.0
libtpu: 0.0.40
codegen_flags: <defaults>
</compile_context>

<pallas_src>
import functools

import jax
import jax.numpy as jnp
from jax import lax
from jax.experimental import pallas as pl
from jax.experimental.pallas import tpu as pltpu


_ROW_CHUNK = 128  # rows relayouted per vxpose; keeps per-chunk temps in vregs


def _l2_link_kernel(x1_ref, x2_ref, out_ref, *, margin_sq):
    # x1/x2: VMEM (tm, D); out: VMEM (2, tm).  margin_sq is a Python constant.
    tm = x1_ref.shape[0]
    for c in range(tm // _ROW_CHUNK):           # unrolled; tm/128 <= 64 chunks
        r0 = c * _ROW_CHUNK
        x1c = x1_ref[r0:r0 + _ROW_CHUNK, :]
        x2c = x2_ref[r0:r0 + _ROW_CHUNK, :]
        # Subtract in the input dtype (bf16 stays bf16 on v6e/v7x); upcast only
        # for the square/accumulate.
        d = (x1c - x2c).astype(jnp.float32)
        sq = jnp.sum(d * d, axis=-1, keepdims=True)          # (128, 1) f32
        # sq < margin*|margin|  <=>  norm < margin  (any sign of margin).
        logit = (sq < margin_sq).astype(jnp.float32)         # (128, 1)
        # Relayout the sublane-major per-row logits to lane-major with a single
        # (128, 128) XLU transpose (XLU slot is otherwise idle here).
        lt = jnp.transpose(
            jnp.broadcast_to(logit, (_ROW_CHUNK, 128)), (1, 0))   # (128, 128)
        row = lt[0:1, :]                                      # (1, 128) lane-major
        out_ref[0:1, r0:r0 + _ROW_CHUNK] = 1.0 - row          # column 0 of (N, 2)
        out_ref[1:2, r0:r0 + _ROW_CHUNK] = row                # column 1 of (N, 2)


def _choose_tm(n, d, itemsize, block_budget_bytes):
    """Row-tile size: padded-footprint aware, multiple of 128, >=2 steps if possible."""
    d_pad = ((d + 127) // 128) * 128
    # 2 inputs x 2 pipeline buffers (lane-padded) + sublane-padded (2, tm) output x2.
    per_row = 4 * d_pad * itemsize + 2 * 8 * 4
    tm = block_budget_bytes // per_row
    tm = min(tm, 8192, ((n + 127) // 128) * 128)
    if n > 128:
        # Guarantee >= 2 grid steps so "parallel" shards across v7x's two TCs.
        tm = min(tm, (((n + 1) // 2 + 127) // 128) * 128)
    return int(max(128, (tm // 128) * 128))


def l2_link_predictor(x1, x2, margin=1.0, *,
                      vmem_block_budget=20 * 1024 * 1024):
    """Pallas implementation of L2LinkPredictor.forward for 2-D inputs (N, D).

    Accepts f32 or bf16 inputs. Returns (N, 2) float32.
    """
    assert x1.shape == x2.shape and x1.ndim == 2
    N, D = x1.shape

    # Sign-correct squared margin (no sqrt in the kernel).
    margin_sq = float(margin) * abs(float(margin))

    elem = jnp.dtype(x1.dtype).itemsize
    tm = _choose_tm(N, D, elem, vmem_block_budget)
    grid = pl.cdiv(N, tm)                      # ragged tail masked by Pallas

    kernel = functools.partial(_l2_link_kernel, margin_sq=margin_sq)

    out_t = pl.pallas_call(
        kernel,
        out_shape=jax.ShapeDtypeStruct((2, N), jnp.float32),   # lane-dense layout
        grid=(grid,),
        in_specs=[
            pl.BlockSpec((tm, D), lambda i: (i, 0)),            # x1 row tile
            pl.BlockSpec((tm, D), lambda i: (i, 0)),            # x2 row tile
        ],
        out_specs=pl.BlockSpec((2, tm), lambda i: (0, i)),
        compiler_params=pltpu.CompilerParams(
            dimension_semantics=("parallel",),
            vmem_limit_bytes=48 * 1024 * 1024),                 # <= v7x 64 MiB physical
    )(x1, x2)

    # Tiny (2, N) -> (N, 2) transpose in the wrapper (8*N bytes).
    return out_t.T


def l2_link_predictor_ref(x1, x2, margin=1.0):
    # Pure-JAX reference mirroring the PyTorch forward (diff in the input
    # dtype, norm accumulated in f32 -- matches the kernel's formulation).
    d = (x1 - x2).astype(jnp.float32)
    norm = jnp.sqrt(jnp.sum(d * d, axis=-1, keepdims=True))
    logit = (norm < margin).astype(jnp.float32)
    return jnp.concatenate([1.0 - logit, logit], axis=1)


if __name__ == "__main__":
    key = jax.random.PRNGKey(0)
    k1, k2 = jax.random.split(key)

    N, D = 64, 32  # small batch of node-pair embeddings
    x1 = jax.random.normal(k1, (N, D), dtype=jnp.float32)
    # Make x2 sometimes close to x1 (within margin) and sometimes far.
    noise = jax.random.normal(k2, (N, D), dtype=jnp.float32)
    scale = jnp.where((jnp.arange(N) % 2 == 0), 0.05, 2.0)[:, None]
    x2 = x1 + scale * noise

    # f32 path
    out = l2_link_predictor(x1, x2, margin=1.0)
    out = jax.block_until_ready(out)
    ref = l2_link_predictor_ref(x1, x2, margin=1.0)
    assert out.shape == (N, 2)
    assert jnp.allclose(out, ref), "f32 mismatch vs pure-JAX reference"
    assert jnp.allclose(out.sum(axis=1), 1.0)

    # bf16 inputs (half the HBM traffic).
    x1b = x1.astype(jnp.bfloat16)
    x2b = x2.astype(jnp.bfloat16)
    out_b = l2_link_predictor(x1b, x2b, margin=1.0)
    out_b = jax.block_until_ready(out_b)
    ref_b = l2_link_predictor_ref(x1b, x2b, margin=1.0)
    assert jnp.allclose(out_b, ref_b), "bf16 mismatch vs pure-JAX reference"

    # Ragged N (not a multiple of 8 / of the tile): boundary block is masked.
    Nr = 50
    out_r = l2_link_predictor(x1[:Nr], x2[:Nr], margin=1.0)
    out_r = jax.block_until_ready(out_r)
    ref_r = l2_link_predictor_ref(x1[:Nr], x2[:Nr], margin=1.0)
    assert out_r.shape == (Nr, 2)
    assert jnp.allclose(out_r, ref_r), "ragged-tail mismatch vs pure-JAX reference"

    print("KERNEL_OK")
</pallas_src>

<mosaic_0001>
module attributes {stable_mosaic.version = 11 : i64} {
  func.func @_l2_link_kernel(%arg0: i32, %arg1: memref<128x32xf32, #tpu.memory_space<vmem>>, %arg2: memref<128x32xf32, #tpu.memory_space<vmem>>, %arg3: memref<2x128xf32, #tpu.memory_space<vmem>>) attributes {dimension_semantics = [#tpu.dimension_semantics<parallel>], iteration_bounds = array<i64: 1>, scalar_prefetch = 0 : i64, scratch_operands = 0 : i64, tpu.core_type = #tpu.core_type<tc>, window_params = [{transform_indices = @transform_0, window_bounds = array<i64: 128, 32>}, {transform_indices = @transform_1, window_bounds = array<i64: 128, 32>}, {transform_indices = @transform_2, window_bounds = array<i64: 2, 128>}]} {
    %c0 = arith.constant 0 : index
    %c0_0 = arith.constant 0 : index
    %0 = vector.load %arg1[%c0, %c0_0] : memref<128x32xf32, #tpu.memory_space<vmem>>, vector<128x32xf32>
    %c0_1 = arith.constant 0 : index
    %c0_2 = arith.constant 0 : index
    %1 = vector.load %arg2[%c0_1, %c0_2] : memref<128x32xf32, #tpu.memory_space<vmem>>, vector<128x32xf32>
    %2 = arith.subf %0, %1 : vector<128x32xf32>
    %3 = arith.mulf %2, %2 : vector<128x32xf32>
    %cst = arith.constant dense<0.000000e+00> : vector<128xf32>
    %4 = vector.multi_reduction <add>, %3, %cst [1] : vector<128x32xf32> to vector<128xf32>
    %5 = vector.shape_cast %4 : vector<128xf32> to vector<128x1xf32>
    %cst_3 = arith.constant 1.000000e+00 : f32
    %6 = vector.broadcast %cst_3 : f32 to vector<128x1xf32>
    %7 = arith.cmpf olt, %5, %6 : vector<128x1xf32>
    %8 = arith.extui %7 : vector<128x1xi1> to vector<128x1xi32>
    %9 = arith.sitofp %8 : vector<128x1xi32> to vector<128x1xf32>
    %10 = vector.shape_cast %9 : vector<128x1xf32> to vector<128x1xf32>
    %11 = vector.broadcast %10 : vector<128x1xf32> to vector<128x128xf32>
    %12 = tpu.transpose %11, [1, 0] : vector<128x128xf32> -> vector<128x128xf32>
    %13 = vector.extract_strided_slice %12 {offsets = [0, 0], sizes = [1, 128], strides = [1, 1]} : vector<128x128xf32> to vector<1x128xf32>
    %cst_4 = arith.constant 1.000000e+00 : f32
    %14 = vector.broadcast %cst_4 : f32 to vector<1x128xf32>
    %15 = arith.subf %14, %13 : vector<1x128xf32>
    %c0_5 = arith.constant 0 : index
    %c0_6 = arith.constant 0 : index
    %16 = vector.load %arg3[%c0_5, %c0_6] : memref<2x128xf32, #tpu.memory_space<vmem>>, vector<1x128xf32>
    tpu.vector_store %arg3[%c0_5, %c0_6], %15 {strides = array<i32>} : memref<2x128xf32, #tpu.memory_space<vmem>>, vector<1x128xf32>,
    %c1 = arith.constant 1 : index
    %c0_7 = arith.constant 0 : index
    %17 = vector.load %arg3[%c1, %c0_7] : memref<2x128xf32, #tpu.memory_space<vmem>>, vector<1x128xf32>
    tpu.vector_store %arg3[%c1, %c0_7], %13 {strides = array<i32>} : memref<2x128xf32, #tpu.memory_space<vmem>>, vector<1x128xf32>,
    return
  }
  func.func @transform_0(%arg0: i32) -> (i32, i32) {
    %c0_i32 = arith.constant 0 : i32
    %c0_i32_0 = arith.constant 0 : i32
    return %arg0, %c0_i32 : i32, i32
  }
  func.func @transform_1(%arg0: i32) -> (i32, i32) {
    %c0_i32 = arith.constant 0 : i32
    %c0_i32_0 = arith.constant 0 : i32
    return %arg0, %c0_i32 : i32, i32
  }
  func.func @transform_2(%arg0: i32) -> (i32, i32) {
    %c0_i32 = arith.constant 0 : i32
    %c0_i32_0 = arith.constant 0 : i32
    return %c0_i32, %arg0 : i32, i32
  }
}

</mosaic_0001>

<bundles_post_ra>
// kernel: tpu_custom_call.1
= control target key start
LH: loop header
LB: loop body
LE: loop exit
PB: predicated region body
PF: predicated region fallthrough
CT: control target
= control target key end

     0   :  { %vm76_vm0 = vcmask 261120   ;;  %s394_s0 = inlined_call_operand.vmem [shape: f32[64,32], index: 0, kind: input, shape index: {}]   ;;  %s395_s1 = inlined_call_operand.vmem [shape: f32[64,32], index: 1, kind: input, shape index: {}]   ;;  %s396_s2 = inlined_call_operand.hbm [shape: f32[2,64], index: 2, kind: output, shape index: {}]  }
   0x1   :  { %v12_v0 = vld [vmem:[%s394_s0] sm:$0xff]  ;;  %v13_v2 = vld [vmem:[%s394_s0 + $0x8] sm:$0xff]  ;;  %v14_v5 = vld [vmem:[%s394_s0 + $0x10] sm:$0xff] }
   0x2   :  { %v28_v1 = vld [vmem:[%s395_s1] sm:$0xff]  ;;  %v29_v4 = vld [vmem:[%s395_s1 + $0x8] sm:$0xff]  ;;  %v30_v6 = vld [vmem:[%s395_s1 + $0x10] sm:$0xff] }
   0x3   :  { %v44_v3 = vsub.f32 %v12_v0, %v28_v1  ;;  %v45_v7 = vsub.f32 %v13_v2, %v29_v4  ;;  %v46_v8 = vsub.f32 %v14_v5, %v30_v6  ;;  %v15_v9 = vld [vmem:[%s394_s0 + $0x18] sm:$0xff]  ;;  %v16_v11 = vld [vmem:[%s394_s0 + $0x20] sm:$0xff]  ;;  %v17_v15 = vld [vmem:[%s394_s0 + $0x28] sm:$0xff] }
   0x4   :  { %v31_v10 = vld [vmem:[%s395_s1 + $0x18] sm:$0xff]  ;;  %v32_v14 = vld [vmem:[%s395_s1 + $0x20] sm:$0xff]  ;;  %v33_v16 = vld [vmem:[%s395_s1 + $0x28] sm:$0xff] }
   0x5   :  { %v60_v12 = vmul.f32 %v44_v3, %v44_v3  ;;  %v47_v13 = vsub.f32 %v15_v9, %v31_v10  ;;  %v61_v17 = vmul.f32 %v45_v7, %v45_v7  ;;  %v62_v18 = vmul.f32 %v46_v8, %v46_v8  ;;  %v18_v21 = vld [vmem:[%s394_s0 + $0x30] sm:$0xff]  ;;  %v19_v25 = vld [vmem:[%s394_s0 + $0x38] sm:$0xff]  ;;  %v20_v34 = vld [vmem:[%s394_s0 + $0x40] sm:$0xff] }
   0x6   :  { %v48_v19 = vsub.f32 %v16_v11, %v32_v14  ;;  %v49_v20 = vsub.f32 %v17_v15, %v33_v16  ;;  %v34_v22 = vld [vmem:[%s395_s1 + $0x30] sm:$0xff]  ;;  %v35_v26 = vld [vmem:[%s395_s1 + $0x38] sm:$0xff]  ;;  %v36_v35 = vld [vmem:[%s395_s1 + $0x40] sm:$0xff] }
   0x7   :  { %v77_v23 = vsel %vm76_vm0, %v60_v12, 0.0  ;;  %v63_v24 = vmul.f32 %v47_v13, %v47_v13  ;;  %v83_v27 = vsel %vm76_vm0, %v62_v18, 0.0  ;;  %v80_v28 = vsel %vm76_vm0, %v61_v17, 0.0  ;;  %v21_v36 = vld [vmem:[%s394_s0 + $0x48] sm:$0xff] }
   0x8   :  { %78 = vadd.xlane.f32.xlu0 %v77_v23  ;;  %84 = vadd.xlane.f32.xlu1 %v83_v27  ;;  %v64_v29 = vmul.f32 %v48_v19, %v48_v19  ;;  %v50_v30 = vsub.f32 %v18_v21, %v34_v22  ;;  %v65_v32 = vmul.f32 %v49_v20, %v49_v20  ;;  %v37_v37 = vld [vmem:[%s395_s1 + $0x48] sm:$0xff] }
   0x9   :  { %v86_v31 = vsel %vm76_vm0, %v63_v24, 0.0  ;;  %v51_v33 = vsub.f32 %v19_v25, %v35_v26 }
   0xc   :  { %81 = vadd.xlane.f32.xlu0 %v80_v28 }
   0xd   :  { %7 = vsyncpa [#allocation3], 0  ;;  %87 = vadd.xlane.f32.xlu1 %v86_v31  ;;  %v89_v38 = vsel %vm76_vm0, %v64_v29, 0.0  ;;  %v66_v39 = vmul.f32 %v50_v30, %v50_v30  ;;  %v52_v40 = vsub.f32 %v20_v34, %v36_v35  ;;  %v92_v41 = vsel %vm76_vm0, %v65_v32, 0.0  ;;  %v22_v44 = vld [vmem:[%s394_s0 + $0x50] sm:$0xff]  ;;  %v23_v46 = vld [vmem:[%s394_s0 + $0x58] sm:$0xff] }
   0xe   :  { %v67_v42 = vmul.f32 %v51_v33, %v51_v33  ;;  %v53_v43 = vsub.f32 %v21_v36, %v37_v37  ;;  %v38_v45 = vld [vmem:[%s395_s1 + $0x50] sm:$0xff]  ;;  %v39_v47 = vld [vmem:[%s395_s1 + $0x58] sm:$0xff]  ;;  %v24_v54 = vld [vmem:[%s394_s0 + $0x60] sm:$0xff]  ;;  %v262_v18 = vmov 0.0  }
   0xf   :  { %v95_v48 = vsel %vm76_vm0, %v66_v39, 0.0  ;;  %v68_v49 = vmul.f32 %v52_v40, %v52_v40  ;;  %v54_v50 = vsub.f32 %v22_v44, %v38_v45  ;;  %v55_v53 = vsub.f32 %v23_v46, %v39_v47  ;;  %v40_v55 = vld [vmem:[%s395_s1 + $0x60] sm:$0xff]  ;;  %v25_v56 = vld [vmem:[%s394_s0 + $0x68] sm:$0xff]  ;;  %v26_v0 = vld [vmem:[%s394_s0 + $0x70] sm:$0xff] }
  0x10   :  { %90 = vadd.xlane.f32.xlu0 %v89_v38  ;;  %v98_v51 = vsel %vm76_vm0, %v67_v42, 0.0  ;;  %v69_v52 = vmul.f32 %v53_v43, %v53_v43  ;;  %v41_v57 = vld [vmem:[%s395_s1 + $0x68] sm:$0xff]  ;;  %v56_v60 = vsub.f32 %v24_v54, %v40_v55  ;;  %v42_v1 = vld [vmem:[%s395_s1 + $0x70] sm:$0xff]  ;;  %v27_v2 = vld [vmem:[%s394_s0 + $0x78] sm:$0xff]  ;;  %s263_s0 = smov [#allocation2]  }
  0x11   :  { %93 = vadd.xlane.f32.xlu1 %v92_v41  ;;  %v101_v58 = vsel %vm76_vm0, %v68_v49, 0.0  ;;  %v70_v59 = vmul.f32 %v54_v50, %v54_v50  ;;  %v71_v62 = vmul.f32 %v55_v53, %v55_v53  ;;  %v57_v63 = vsub.f32 %v25_v56, %v41_v57  ;;  %v43_v3 = vld [vmem:[%s395_s1 + $0x78] sm:$0xff]  ;;  %s214_s1 = sshll.u32 %s263_s0, 4  ;;  %s215_s1 = int_to_ptr.vmem [resolvable:$true] %s214_s1 }
  0x12   :  { %v104_v61 = vsel %vm76_vm0, %v69_v52, 0.0  ;;  %v72_v5 = vmul.f32 %v56_v60, %v56_v60  ;;  %v58_v6 = vsub.f32 %v26_v0, %v42_v1  ;;  %v59_v9 = vsub.f32 %v27_v2, %v43_v3  ;;  %s240_s17 = scalar_lea.vmem %s215_s1, 32  ;;  %p245_p1 = scmp.lt.s32.totalorder %s215_s1, %s215_s1 }
  0x13   :  { %v107_v4 = vsel %vm76_vm0, %v70_v59, 0.0  ;;  %v110_v7 = vsel %vm76_vm0, %v71_v62, 0.0  ;;  %v73_v8 = vmul.f32 %v57_v63, %v57_v63  ;;  %p241_p0 = scmp.ne.s32.totalorder %s215_s1, %s240_s17  ;;  %p246_p2 = scmp.lt.s32.totalorder %s240_s17, %s240_s17 }
  0x14   :  { %96 = vadd.xlane.f32.xlu0 %v95_v48  ;;  %v113_v10 = vsel %vm76_vm0, %v72_v5, 0.0  ;;  %v74_v11 = vmul.f32 %v58_v6, %v58_v6  ;;  %v75_v13 = vmul.f32 %v59_v9, %v59_v9 }
  0x15   :  { %99 = vadd.xlane.f32.xlu1 %v98_v51  ;;  %v116_v12 = vsel %vm76_vm0, %v73_v8, 0.0  ;;  %p247_p3 = por %p246_p2, %p245_p1 }
  0x16   :  { %v119_v14 = vsel %vm76_vm0, %v74_v11, 0.0  ;;  %v122_v15 = vsel %vm76_vm0, %v75_v13, 0.0 }
  0x17   :  { %p248_p4 = pnand %p247_p3, %p241_p0 }
  0x18   :  { %102 = vadd.xlane.f32.xlu0 %v101_v58 }
  0x19   :  { %105 = vadd.xlane.f32.xlu1 %v104_v61 }
  0x1c   :  { %108 = vadd.xlane.f32.xlu0 %v107_v4 }
  0x1d   :  { %111 = vadd.xlane.f32.xlu1 %v110_v7 }
  0x20   :  { %114 = vadd.xlane.f32.xlu0 %v113_v10 }
  0x21   :  { %117 = vadd.xlane.f32.xlu1 %v116_v12 }
  0x24   :  { %120 = vadd.xlane.f32.xlu0 %v119_v14 }
  0x25   :  { %123 = vadd.xlane.f32.xlu1 %v122_v15 }
  0x91   :  { %v79_v16 = vpop.xlane.xlu0 %78  ;;  %v85_v17 = vpop.xlane.xlu1 %84 }
  0x92   :  { %vm125_vm1 = vcmp.lt.f32.partialorder %v79_v16, 1.0  ;;  %vm127_vm3 = vcmp.lt.f32.partialorder %v85_v17, 1.0 }
  0x93   :  { %v222_v19 = vsel %vm125_vm1, 1.0, %v262_v18  ;;  %v224_v23 = vsel %vm127_vm3, 1.0, %v262_v18 }
  0x94   :  { %173 = vxpose.xlu0.b32.start [1/16] (narrow) %v222_v19, 8 }
  0x95   :  { %v82_v20 = vpop.xlane.xlu0 %81 }
  0x96   :  { %vm126_vm2 = vcmp.lt.f32.partialorder %v82_v20, 1.0  ;;  %v88_v22 = vpop.xlane.xlu1 %87 }
  0x97   :  { %v223_v21 = vsel %vm126_vm2, 1.0, %v262_v18  ;;  %vm128_vm4 = vcmp.lt.f32.partialorder %v88_v22, 1.0 }
  0x98   :  { %174 = vxpose.xlu0.b32.cont [2/16] (narrow) %v223_v21, 8  ;;  %v225_v25 = vsel %vm128_vm4, 1.0, %v262_v18 }
  0x99   :  { %v91_v24 = vpop.xlane.xlu0 %90 }
  0x9a   :  { %vm129_vm5 = vcmp.lt.f32.partialorder %v91_v24, 1.0  ;;  %v94_v26 = vpop.xlane.xlu1 %93 }
  0x9b   :  { %v226_v27 = vsel %vm129_vm5, 1.0, %v262_v18  ;;  %vm130_vm6 = vcmp.lt.f32.partialorder %v94_v26, 1.0 }
  0x9c   :  { %175 = vxpose.xlu0.b32.cont [3/16] (narrow) %v224_v23, 8  ;;  %v227_v29 = vsel %vm130_vm6, 1.0, %v262_v18 }
  0x9d   :  { %v97_v28 = vpop.xlane.xlu0 %96 }
  0x9e   :  { %vm131_vm7 = vcmp.lt.f32.partialorder %v97_v28, 1.0  ;;  %v100_v30 = vpop.xlane.xlu1 %99 }
  0x9f   :  { %v228_v31 = vsel %vm131_vm7, 1.0, %v262_v18  ;;  %vm132_vm8 = vcmp.lt.f32.partialorder %v100_v30, 1.0 }
  0xa0   :  { %176 = vxpose.xlu0.b32.cont [4/16] (narrow) %v225_v25, 8  ;;  %v229_v33 = vsel %vm132_vm8, 1.0, %v262_v18 }
  0xa1   :  { %v103_v32 = vpop.xlane.xlu0 %102 }
  0xa2   :  { %vm133_vm9 = vcmp.lt.f32.partialorder %v103_v32, 1.0  ;;  %v106_v34 = vpop.xlane.xlu1 %105 }
  0xa3   :  { %v230_v35 = vsel %vm133_vm9, 1.0, %v262_v18  ;;  %vm134_vm10 = vcmp.lt.f32.partialorder %v106_v34, 1.0 }
  0xa4   :  { %177 = vxpose.xlu0.b32.cont [5/16] (narrow) %v226_v27, 8  ;;  %v231_v37 = vsel %vm134_vm10, 1.0, %v262_v18 }
  0xa5   :  { %v109_v36 = vpop.xlane.xlu0 %108 }
  0xa6   :  { %vm135_vm11 = vcmp.lt.f32.partialorder %v109_v36, 1.0  ;;  %v112_v38 = vpop.xlane.xlu1 %111 }
  0xa7   :  { %v232_v39 = vsel %vm135_vm11, 1.0, %v262_v18  ;;  %vm136_vm12 = vcmp.lt.f32.partialorder %v112_v38, 1.0 }
  0xa8   :  { %178 = vxpose.xlu0.b32.cont [6/16] (narrow) %v227_v29, 8  ;;  %v233_v41 = vsel %vm136_vm12, 1.0, %v262_v18 }
  0xa9   :  { %v115_v40 = vpop.xlane.xlu0 %114 }
  0xaa   :  { %vm137_vm13 = vcmp.lt.f32.partialorder %v115_v40, 1.0  ;;  %v118_v42 = vpop.xlane.xlu1 %117 }
  0xab   :  { %v234_v43 = vsel %vm137_vm13, 1.0, %v262_v18  ;;  %vm138_vm14 = vcmp.lt.f32.partialorder %v118_v42, 1.0 }
  0xac   :  { %179 = vxpose.xlu0.b32.cont [7/16] (narrow) %v228_v31, 8  ;;  %v235_v45 = vsel %vm138_vm14, 1.0, %v262_v18 }
  0xad   :  { %v121_v44 = vpop.xlane.xlu0 %120 }
  0xae   :  { %vm139_vm15 = vcmp.lt.f32.partialorder %v121_v44, 1.0  ;;  %v124_v46 = vpop.xlane.xlu1 %123 }
  0xaf   :  { %v236_v47 = vsel %vm139_vm15, 1.0, %v262_v18  ;;  %vm140_vm0 = vcmp.lt.f32.partialorder %v124_v46, 1.0 }
  0xb0   :  { %180 = vxpose.xlu0.b32.cont [8/16] (narrow) %v229_v33, 8  ;;  %v237_v48 = vsel %vm140_vm0, 1.0, %v262_v18 }
  0xb4   :  { %181 = vxpose.xlu0.b32.cont [9/16] (narrow) %v230_v35, 8 }
  0xb8   :  { %182 = vxpose.xlu0.b32.cont [10/16] (narrow) %v231_v37, 8 }
  0xbc   :  { %183 = vxpose.xlu0.b32.cont [11/16] (narrow) %v232_v39, 8 }
  0xc0   :  { %184 = vxpose.xlu0.b32.cont [12/16] (narrow) %v233_v41, 8 }
  0xc4   :  { %185 = vxpose.xlu0.b32.cont [13/16] (narrow) %v234_v43, 8 }
  0xc8   :  { %186 = vxpose.xlu0.b32.cont [14/16] (narrow) %v235_v45, 8 }
  0xcc   :  { %187 = vxpose.xlu0.b32.cont [15/16] (narrow) %v236_v47, 8 }
  0xd0   :  { %188 = vxpose.xlu0.b32.end [16/16] (narrow) %v237_v48, 8 }
 0x110   :  { %v189_v49 = vpop.trf.xlu0 }
 0x111   :  { %v205_v50 = vsub.f32 1.0, %v189_v49  ;;  %207 = vst [vmem:[#allocation2 + $0x1] sm:$0x1] %v189_v49 }
 0x113   :  { %206 = vst [vmem:[#allocation2] sm:$0x1] %v205_v50 }
 0x114   :  { %251 = shalt.err (!%p248_p4)
}
 0x115   :  { %217 = dma.vmem_to_hbm [thread:$0]  %s215_s1, 32, %s396_s2, [#allocation3]  }
 0x116   :  { %260 = dma.done.wait [#allocation3], 32  }
 0x117   :  { %261 = vsyncadd [#allocation3], 4294967264 }
 0x118   :  { %221 = vsyncpa [#allocation3], 1 }

</bundles_post_ra>
